<compile_context>
chip_gen: v7x
topology: tpu7x:2x2x1
jax: 0.10.0
libtpu: 0.0.40
codegen_flags: <defaults>
</compile_context>

<pallas_src>
import jax
import jax.numpy as jnp
from jax.experimental import pallas as pl
from jax.experimental.pallas import tpu as pltpu

# ---------------------------------------------------------------------------
# Lane map (single source of truth).
# ---------------------------------------------------------------------------
_L_DIAG0 = 0               # lanes 0..2: diag(T^T G); lanes 3..5: diag(Rf^T G)
_L_DIAG1 = 8               # lanes 8..13: +1 off-diagonals of both products
_L_DIAG2 = 16              # lanes 16..21: +2 off-diagonals of both products
_L_ROT = _L_DIAG1 + 1      # = 9,  fold target: ||T^T G - I||_F
_L_ROT2 = _L_DIAG1 + 4     # = 12, fold target: ||Rf^T G - I||_F
_L_TRANS = 32              # sum_k (T[k,3]-G[k,3])^2   (pre-squared)
_L_TRANS2 = 36             # sum_k (Rf[k,3]-G[k,3])^2  (pre-squared)
_L_LOSS = 1                # total loss lane in the (1,128) output


def _overall_loss_kernel(scal_ref, t_ref, rf_ref, g_ref, out_ref):
    # scal_ref: SMEM (4,) f32 = [base_weighted_sum, w_trans, w_rot, use_pose]
    # t_ref/rf_ref/g_ref: VMEM (4,4) f32 raw transforms (no host packing)
    # out_ref: VMEM (1,128) f32; lane 1 = loss, lane 9 = l_rot,
    #          lane 12 = l_rot2, lane 32 = l_trans, lane 36 = l_trans2.
    T = t_ref[...]
    Rf = rf_ref[...]
    G = g_ref[...]

    t = [T[0:3, i:i + 1] for i in range(3)]       # (3,1) columns, rotation blocks
    r = [Rf[0:3, i:i + 1] for i in range(3)]
    g = [G[0:3, i:i + 1] for i in range(3)]
    dT = T[0:3, 3:4] - G[0:3, 3:4]                # translation residuals
    dR = Rf[0:3, 3:4] - G[0:3, 3:4]

    # 54-MAC VPU contraction (no MXU): (lane, a, b) -> pre[k, lane] = a[k]*b[k]
    placements = [
        # main diagonals (identity subtracted after the k-contraction)
        (_L_DIAG0 + 0, t[0], g[0]), (_L_DIAG0 + 1, t[1], g[1]), (_L_DIAG0 + 2, t[2], g[2]),
        (_L_DIAG0 + 3, r[0], g[0]), (_L_DIAG0 + 4, r[1], g[1]), (_L_DIAG0 + 5, r[2], g[2]),
        # off-diagonal s=1: P[i, (i+1) % 3]
        (_L_DIAG1 + 0, t[0], g[1]), (_L_DIAG1 + 1, t[1], g[2]), (_L_DIAG1 + 2, t[2], g[0]),
        (_L_DIAG1 + 3, r[0], g[1]), (_L_DIAG1 + 4, r[1], g[2]), (_L_DIAG1 + 5, r[2], g[0]),
        # off-diagonal s=2: P[i, (i+2) % 3]
        (_L_DIAG2 + 0, t[0], g[2]), (_L_DIAG2 + 1, t[1], g[0]), (_L_DIAG2 + 2, t[2], g[1]),
        (_L_DIAG2 + 3, r[0], g[2]), (_L_DIAG2 + 4, r[1], g[0]), (_L_DIAG2 + 5, r[2], g[1]),
        # translation residuals, already squared (bypass the identity/square step)
        (_L_TRANS, dT, dT), (_L_TRANS2, dR, dR),
    ]
    lane3 = jax.lax.broadcasted_iota(jnp.int32, (3, 128), 1)
    pre = jnp.zeros((3, 128), jnp.float32)
    for c, a, b in placements:
        pre = pre + jnp.where(lane3 == c, a * b, 0.0)

    # Single sublane reduction: contract over k for every lane at once.
    v = jnp.sum(pre, axis=0, keepdims=True)                       # (1,128)

    lane = jax.lax.broadcasted_iota(jnp.int32, (1, 128), 1)
    translane = (lane == _L_TRANS) | (lane == _L_TRANS2)
    eyevec = jnp.where(lane < 6, 1.0, 0.0)       # identity hits diag-0 lanes 0..5
    resid = v - eyevec
    sq = jnp.where(translane, v, resid * resid)  # translation lanes already squared

    # Symmetric lane folds (+-8 then +-1): each 9-lane rotation group sums onto
    # its centre lane.  Both roll directions are used, so the result does not
    # depend on the hardware rotate direction.  (128 - 8 = 120, 128 - 1 = 127.)
    f1 = (sq + pltpu.roll(sq, shift=8, axis=1)
          + pltpu.roll(sq, shift=120, axis=1))
    f2 = (f1 + pltpu.roll(f1, shift=1, axis=1)
          + pltpu.roll(f1, shift=127, axis=1))

    keep = (lane == _L_ROT) | (lane == _L_ROT2) | translane
    norms = jnp.sqrt(jnp.where(keep, f2, 0.0))   # one lane-packed sqrt pass

    base = scal_ref[0]
    w_trans = scal_ref[1]
    w_rot = scal_ref[2]
    use_pose = scal_ref[3]                       # 1.0 iff epoch > pretrain_feat_epochs

    caps = jnp.where(translane, 2.0, 1.0)        # clamp_max: 2.0 trans / 1.0 rot
    wvec = jnp.where(translane, w_trans, w_rot) * use_pose
    pose = jnp.sum(jnp.minimum(norms, caps) * wvec, axis=1, keepdims=True)   # (1,1)

    # Lane-dense single (1,128) writeback: lane 1 = loss, lane 9 = l_rot, ...
    out_ref[...] = jnp.where(lane == _L_LOSS, base + pose, norms)


@jax.jit
def _overall_loss_impl(transform, refined_transform, gt_transform,
                       l_feat, l_desc, l_ov, l_corr,
                       weights, epoch, pretrain_feat_epochs):
    # weights: (6,) f32 = [w_feat, w_desc, w_ov, w_corr, w_trans, w_rot]
    T = transform.astype(jnp.float32)
    Rf = refined_transform.astype(jnp.float32)
    G = gt_transform.astype(jnp.float32)

    base = (l_feat * weights[0] + l_desc * weights[1]
            + l_ov * weights[2] + l_corr * weights[3]).astype(jnp.float32)
    use_pose = (epoch > pretrain_feat_epochs).astype(jnp.float32)
    scal = jnp.stack([base, weights[4], weights[5], use_pose]).astype(jnp.float32)

    return pl.pallas_call(
        _overall_loss_kernel,
        out_shape=jax.ShapeDtypeStruct((1, 128), jnp.float32),
        in_specs=[
            pl.BlockSpec(memory_space=pltpu.MemorySpace.SMEM),   # 4 scalars
            pl.BlockSpec(memory_space=pltpu.MemorySpace.VMEM),   # transform (4,4)
            pl.BlockSpec(memory_space=pltpu.MemorySpace.VMEM),   # refined_transform (4,4)
            pl.BlockSpec(memory_space=pltpu.MemorySpace.VMEM),   # gt_transform (4,4)
        ],
        out_specs=pl.BlockSpec(memory_space=pltpu.MemorySpace.VMEM),
        cost_estimate=pl.CostEstimate(flops=220, bytes_accessed=736, transcendentals=4),
    )(scal, T, Rf, G)


def overall_loss(output_dict, epoch, cfg):
    """JAX/Pallas port of OverallLoss.forward.

    TODO(synk): ProbChamferLoss / SpotMatchingLoss / CoarseMatchingLoss /
    KeypointMatchingLoss are not defined in the provided source, so their scalar
    outputs (l_det, l_spot, l_feat, l_desc, l_ov, l_corr) are taken as inputs.
    """
    weights = jnp.array([cfg["weight_feat_loss"], cfg["weight_desc_loss"],
                         cfg["weight_overlap_loss"], cfg["weight_corr_loss"],
                         cfg["weight_trans_loss"], cfg["weight_rot_loss"]],
                        jnp.float32)
    out = _overall_loss_impl(
        output_dict["transform"], output_dict["refined_transform"],
        output_dict["gt_transform"],
        output_dict["l_feat"], output_dict["l_desc"],
        output_dict["l_ov"], output_dict["l_corr"],
        weights,
        jnp.asarray(epoch, jnp.int32),
        jnp.asarray(cfg["pretrain_feat_epochs"], jnp.int32))

    return {
        "loss": out[0, _L_LOSS],
        "l_rot": out[0, _L_ROT],
        "l_det": output_dict["l_det"], "l_spot": output_dict["l_spot"],
        "l_feat": output_dict["l_feat"], "l_corr": output_dict["l_corr"],
        "l_desc": output_dict["l_desc"], "l_ov": output_dict["l_ov"],
    }


def _reference(od, epoch, cfg):
    i3 = jnp.eye(3, dtype=jnp.float32)
    l_trans = jnp.linalg.norm(od["transform"][:3, 3] - od["gt_transform"][:3, 3])
    l_rot = jnp.linalg.norm(od["transform"][:3, :3].T @ od["gt_transform"][:3, :3] - i3)
    l_trans2 = jnp.linalg.norm(od["refined_transform"][:3, 3] - od["gt_transform"][:3, 3])
    l_rot2 = jnp.linalg.norm(od["refined_transform"][:3, :3].T @ od["gt_transform"][:3, :3] - i3)
    loss = (od["l_feat"] * cfg["weight_feat_loss"]
            + od["l_desc"] * cfg["weight_desc_loss"]
            + od["l_ov"] * cfg["weight_overlap_loss"]
            + od["l_corr"] * cfg["weight_corr_loss"])
    if epoch > cfg["pretrain_feat_epochs"]:
        loss = loss + (jnp.minimum(l_trans, 2.0) + jnp.minimum(l_trans2, 2.0)) * cfg["weight_trans_loss"]
        loss = loss + (jnp.minimum(l_rot, 1.0) + jnp.minimum(l_rot2, 1.0)) * cfg["weight_rot_loss"]
    return loss, l_rot


if __name__ == "__main__":
    key = jax.random.PRNGKey(0)
    k1, k2, k3, k4 = jax.random.split(key, 4)

    def random_rigid(k):
        ka, kt = jax.random.split(k)
        a = jax.random.normal(ka, (3, 3), dtype=jnp.float32)
        q, rq = jnp.linalg.qr(a)
        q = q * jnp.sign(jnp.diag(rq))[None, :]
        q = q * jnp.linalg.det(q)          # force det = +1
        tvec = jax.random.normal(kt, (3,), dtype=jnp.float32) * 0.5
        m = jnp.eye(4, dtype=jnp.float32)
        return m.at[:3, :3].set(q).at[:3, 3].set(tvec)

    sub_vals = jax.random.uniform(k4, (6,), minval=0.1, maxval=1.0, dtype=jnp.float32)
    output_dict = {
        "transform": random_rigid(k1),
        "refined_transform": random_rigid(k2),
        "gt_transform": random_rigid(k3),
        # TODO(synk): placeholder scalar sub-losses (their nn.Modules are undefined upstream).
        "l_det": sub_vals[0], "l_spot": sub_vals[1], "l_feat": sub_vals[2],
        "l_desc": sub_vals[3], "l_ov": sub_vals[4], "l_corr": sub_vals[5],
    }
    cfg = dict(weight_det_loss=1.0, weight_spot_loss=1.0, weight_feat_loss=0.5,
               weight_desc_loss=1.0, weight_overlap_loss=1.0, weight_corr_loss=1.0,
               weight_trans_loss=1.0, weight_rot_loss=1.0, pretrain_feat_epochs=5)

    # Epoch past the pretrain gate (pose losses active).
    epoch = 10
    out = jax.block_until_ready(overall_loss(output_dict, epoch, cfg))
    ref_loss, ref_lrot = _reference(output_dict, epoch, cfg)
    assert jnp.allclose(out["loss"], ref_loss, atol=1e-4, rtol=1e-4), (out["loss"], ref_loss)
    assert jnp.allclose(out["l_rot"], ref_lrot, atol=1e-4, rtol=1e-4), (out["l_rot"], ref_lrot)

    # Epoch inside the pretrain window (pose losses gated off).
    epoch2 = 3
    out2 = jax.block_until_ready(overall_loss(output_dict, epoch2, cfg))
    ref_loss2, _ = _reference(output_dict, epoch2, cfg)
    assert jnp.allclose(out2["loss"], ref_loss2, atol=1e-4, rtol=1e-4), (out2["loss"], ref_loss2)

    print("KERNEL_OK")
</pallas_src>

<mosaic_0001>
module attributes {stable_mosaic.version = 11 : i64} {
  func.func @_overall_loss_kernel(%arg0: memref<4xf32, #tpu.memory_space<smem>>, %arg1: memref<4x4xf32, #tpu.memory_space<vmem>>, %arg2: memref<4x4xf32, #tpu.memory_space<vmem>>, %arg3: memref<4x4xf32, #tpu.memory_space<vmem>>, %arg4: memref<1x128xf32, #tpu.memory_space<vmem>>) attributes {dimension_semantics = [], scalar_prefetch = 0 : i64, scratch_operands = 0 : i64, tpu.core_type = #tpu.core_type<tc>} {
    %c0 = arith.constant 0 : index
    %c0_0 = arith.constant 0 : index
    %0 = vector.load %arg1[%c0, %c0_0] : memref<4x4xf32, #tpu.memory_space<vmem>>, vector<4x4xf32>
    %c0_1 = arith.constant 0 : index
    %c0_2 = arith.constant 0 : index
    %1 = vector.load %arg2[%c0_1, %c0_2] : memref<4x4xf32, #tpu.memory_space<vmem>>, vector<4x4xf32>
    %c0_3 = arith.constant 0 : index
    %c0_4 = arith.constant 0 : index
    %2 = vector.load %arg3[%c0_3, %c0_4] : memref<4x4xf32, #tpu.memory_space<vmem>>, vector<4x4xf32>
    %3 = vector.extract_strided_slice %0 {offsets = [0, 0], sizes = [3, 1], strides = [1, 1]} : vector<4x4xf32> to vector<3x1xf32>
    %4 = vector.extract_strided_slice %0 {offsets = [0, 1], sizes = [3, 1], strides = [1, 1]} : vector<4x4xf32> to vector<3x1xf32>
    %5 = vector.extract_strided_slice %0 {offsets = [0, 2], sizes = [3, 1], strides = [1, 1]} : vector<4x4xf32> to vector<3x1xf32>
    %6 = vector.extract_strided_slice %1 {offsets = [0, 0], sizes = [3, 1], strides = [1, 1]} : vector<4x4xf32> to vector<3x1xf32>
    %7 = vector.extract_strided_slice %1 {offsets = [0, 1], sizes = [3, 1], strides = [1, 1]} : vector<4x4xf32> to vector<3x1xf32>
    %8 = vector.extract_strided_slice %1 {offsets = [0, 2], sizes = [3, 1], strides = [1, 1]} : vector<4x4xf32> to vector<3x1xf32>
    %9 = vector.extract_strided_slice %2 {offsets = [0, 0], sizes = [3, 1], strides = [1, 1]} : vector<4x4xf32> to vector<3x1xf32>
    %10 = vector.extract_strided_slice %2 {offsets = [0, 1], sizes = [3, 1], strides = [1, 1]} : vector<4x4xf32> to vector<3x1xf32>
    %11 = vector.extract_strided_slice %2 {offsets = [0, 2], sizes = [3, 1], strides = [1, 1]} : vector<4x4xf32> to vector<3x1xf32>
    %12 = vector.extract_strided_slice %0 {offsets = [0, 3], sizes = [3, 1], strides = [1, 1]} : vector<4x4xf32> to vector<3x1xf32>
    %13 = vector.extract_strided_slice %2 {offsets = [0, 3], sizes = [3, 1], strides = [1, 1]} : vector<4x4xf32> to vector<3x1xf32>
    %14 = arith.subf %12, %13 : vector<3x1xf32>
    %15 = vector.extract_strided_slice %1 {offsets = [0, 3], sizes = [3, 1], strides = [1, 1]} : vector<4x4xf32> to vector<3x1xf32>
    %16 = vector.extract_strided_slice %2 {offsets = [0, 3], sizes = [3, 1], strides = [1, 1]} : vector<4x4xf32> to vector<3x1xf32>
    %17 = arith.subf %15, %16 : vector<3x1xf32>
    %18 = tpu.iota {dimensions = array<i32: 1>} : vector<3x128xi32>
    %cst = arith.constant 0.000000e+00 : f32
    %19 = vector.broadcast %cst : f32 to vector<3x128xf32>
    %c0_i32 = arith.constant 0 : i32
    %20 = vector.broadcast %c0_i32 : i32 to vector<3x128xi32>
    %21 = arith.cmpi eq, %18, %20 : vector<3x128xi32>
    %22 = arith.mulf %3, %9 : vector<3x1xf32>
    %cst_5 = arith.constant 0.000000e+00 : f32
    %23 = vector.shape_cast %22 : vector<3x1xf32> to vector<3x1xf32>
    %24 = vector.broadcast %23 : vector<3x1xf32> to vector<3x128xf32>
    %25 = vector.broadcast %cst_5 : f32 to vector<3x128xf32>
    %26 = arith.select %21, %24, %25 : vector<3x128xi1>, vector<3x128xf32>
    %27 = arith.addf %19, %26 : vector<3x128xf32>
    %c1_i32 = arith.constant 1 : i32
    %28 = vector.broadcast %c1_i32 : i32 to vector<3x128xi32>
    %29 = arith.cmpi eq, %18, %28 : vector<3x128xi32>
    %30 = arith.mulf %4, %10 : vector<3x1xf32>
    %cst_6 = arith.constant 0.000000e+00 : f32
    %31 = vector.shape_cast %30 : vector<3x1xf32> to vector<3x1xf32>
    %32 = vector.broadcast %31 : vector<3x1xf32> to vector<3x128xf32>
    %33 = vector.broadcast %cst_6 : f32 to vector<3x128xf32>
    %34 = arith.select %29, %32, %33 : vector<3x128xi1>, vector<3x128xf32>
    %35 = arith.addf %27, %34 : vector<3x128xf32>
    %c2_i32 = arith.constant 2 : i32
    %36 = vector.broadcast %c2_i32 : i32 to vector<3x128xi32>
    %37 = arith.cmpi eq, %18, %36 : vector<3x128xi32>
    %38 = arith.mulf %5, %11 : vector<3x1xf32>
    %cst_7 = arith.constant 0.000000e+00 : f32
    %39 = vector.shape_cast %38 : vector<3x1xf32> to vector<3x1xf32>
    %40 = vector.broadcast %39 : vector<3x1xf32> to vector<3x128xf32>
    %41 = vector.broadcast %cst_7 : f32 to vector<3x128xf32>
    %42 = arith.select %37, %40, %41 : vector<3x128xi1>, vector<3x128xf32>
    %43 = arith.addf %35, %42 : vector<3x128xf32>
    %c3_i32 = arith.constant 3 : i32
    %44 = vector.broadcast %c3_i32 : i32 to vector<3x128xi32>
    %45 = arith.cmpi eq, %18, %44 : vector<3x128xi32>
    %46 = arith.mulf %6, %9 : vector<3x1xf32>
    %cst_8 = arith.constant 0.000000e+00 : f32
    %47 = vector.shape_cast %46 : vector<3x1xf32> to vector<3x1xf32>
    %48 = vector.broadcast %47 : vector<3x1xf32> to vector<3x128xf32>
    %49 = vector.broadcast %cst_8 : f32 to vector<3x128xf32>
    %50 = arith.select %45, %48, %49 : vector<3x128xi1>, vector<3x128xf32>
    %51 = arith.addf %43, %50 : vector<3x128xf32>
    %c4_i32 = arith.constant 4 : i32
    %52 = vector.broadcast %c4_i32 : i32 to vector<3x128xi32>
    %53 = arith.cmpi eq, %18, %52 : vector<3x128xi32>
    %54 = arith.mulf %7, %10 : vector<3x1xf32>
    %cst_9 = arith.constant 0.000000e+00 : f32
    %55 = vector.shape_cast %54 : vector<3x1xf32> to vector<3x1xf32>
    %56 = vector.broadcast %55 : vector<3x1xf32> to vector<3x128xf32>
    %57 = vector.broadcast %cst_9 : f32 to vector<3x128xf32>
    %58 = arith.select %53, %56, %57 : vector<3x128xi1>, vector<3x128xf32>
    %59 = arith.addf %51, %58 : vector<3x128xf32>
    %c5_i32 = arith.constant 5 : i32
    %60 = vector.broadcast %c5_i32 : i32 to vector<3x128xi32>
    %61 = arith.cmpi eq, %18, %60 : vector<3x128xi32>
    %62 = arith.mulf %8, %11 : vector<3x1xf32>
    %cst_10 = arith.constant 0.000000e+00 : f32
    %63 = vector.shape_cast %62 : vector<3x1xf32> to vector<3x1xf32>
    %64 = vector.broadcast %63 : vector<3x1xf32> to vector<3x128xf32>
    %65 = vector.broadcast %cst_10 : f32 to vector<3x128xf32>
    %66 = arith.select %61, %64, %65 : vector<3x128xi1>, vector<3x128xf32>
    %67 = arith.addf %59, %66 : vector<3x128xf32>
    %c8_i32 = arith.constant 8 : i32
    %68 = vector.broadcast %c8_i32 : i32 to vector<3x128xi32>
    %69 = arith.cmpi eq, %18, %68 : vector<3x128xi32>
    %70 = arith.mulf %3, %10 : vector<3x1xf32>
    %cst_11 = arith.constant 0.000000e+00 : f32
    %71 = vector.shape_cast %70 : vector<3x1xf32> to vector<3x1xf32>
    %72 = vector.broadcast %71 : vector<3x1xf32> to vector<3x128xf32>
    %73 = vector.broadcast %cst_11 : f32 to vector<3x128xf32>
    %74 = arith.select %69, %72, %73 : vector<3x128xi1>, vector<3x128xf32>
    %75 = arith.addf %67, %74 : vector<3x128xf32>
    %c9_i32 = arith.constant 9 : i32
    %76 = vector.broadcast %c9_i32 : i32 to vector<3x128xi32>
    %77 = arith.cmpi eq, %18, %76 : vector<3x128xi32>
    %78 = arith.mulf %4, %11 : vector<3x1xf32>
    %cst_12 = arith.constant 0.000000e+00 : f32
    %79 = vector.shape_cast %78 : vector<3x1xf32> to vector<3x1xf32>
    %80 = vector.broadcast %79 : vector<3x1xf32> to vector<3x128xf32>
    %81 = vector.broadcast %cst_12 : f32 to vector<3x128xf32>
    %82 = arith.select %77, %80, %81 : vector<3x128xi1>, vector<3x128xf32>
    %83 = arith.addf %75, %82 : vector<3x128xf32>
    %c10_i32 = arith.constant 10 : i32
    %84 = vector.broadcast %c10_i32 : i32 to vector<3x128xi32>
    %85 = arith.cmpi eq, %18, %84 : vector<3x128xi32>
    %86 = arith.mulf %5, %9 : vector<3x1xf32>
    %cst_13 = arith.constant 0.000000e+00 : f32
    %87 = vector.shape_cast %86 : vector<3x1xf32> to vector<3x1xf32>
    %88 = vector.broadcast %87 : vector<3x1xf32> to vector<3x128xf32>
    %89 = vector.broadcast %cst_13 : f32 to vector<3x128xf32>
    %90 = arith.select %85, %88, %89 : vector<3x128xi1>, vector<3x128xf32>
    %91 = arith.addf %83, %90 : vector<3x128xf32>
    %c11_i32 = arith.constant 11 : i32
    %92 = vector.broadcast %c11_i32 : i32 to vector<3x128xi32>
    %93 = arith.cmpi eq, %18, %92 : vector<3x128xi32>
    %94 = arith.mulf %6, %10 : vector<3x1xf32>
    %cst_14 = arith.constant 0.000000e+00 : f32
    %95 = vector.shape_cast %94 : vector<3x1xf32> to vector<3x1xf32>
    %96 = vector.broadcast %95 : vector<3x1xf32> to vector<3x128xf32>
    %97 = vector.broadcast %cst_14 : f32 to vector<3x128xf32>
    %98 = arith.select %93, %96, %97 : vector<3x128xi1>, vector<3x128xf32>
    %99 = arith.addf %91, %98 : vector<3x128xf32>
    %c12_i32 = arith.constant 12 : i32
    %100 = vector.broadcast %c12_i32 : i32 to vector<3x128xi32>
    %101 = arith.cmpi eq, %18, %100 : vector<3x128xi32>
    %102 = arith.mulf %7, %11 : vector<3x1xf32>
    %cst_15 = arith.constant 0.000000e+00 : f32
    %103 = vector.shape_cast %102 : vector<3x1xf32> to vector<3x1xf32>
    %104 = vector.broadcast %103 : vector<3x1xf32> to vector<3x128xf32>
    %105 = vector.broadcast %cst_15 : f32 to vector<3x128xf32>
    %106 = arith.select %101, %104, %105 : vector<3x128xi1>, vector<3x128xf32>
    %107 = arith.addf %99, %106 : vector<3x128xf32>
    %c13_i32 = arith.constant 13 : i32
    %108 = vector.broadcast %c13_i32 : i32 to vector<3x128xi32>
    %109 = arith.cmpi eq, %18, %108 : vector<3x128xi32>
    %110 = arith.mulf %8, %9 : vector<3x1xf32>
    %cst_16 = arith.constant 0.000000e+00 : f32
    %111 = vector.shape_cast %110 : vector<3x1xf32> to vector<3x1xf32>
    %112 = vector.broadcast %111 : vector<3x1xf32> to vector<3x128xf32>
    %113 = vector.broadcast %cst_16 : f32 to vector<3x128xf32>
    %114 = arith.select %109, %112, %113 : vector<3x128xi1>, vector<3x128xf32>
    %115 = arith.addf %107, %114 : vector<3x128xf32>
    %c16_i32 = arith.constant 16 : i32
    %116 = vector.broadcast %c16_i32 : i32 to vector<3x128xi32>
    %117 = arith.cmpi eq, %18, %116 : vector<3x128xi32>
    %118 = arith.mulf %3, %11 : vector<3x1xf32>
    %cst_17 = arith.constant 0.000000e+00 : f32
    %119 = vector.shape_cast %118 : vector<3x1xf32> to vector<3x1xf32>
    %120 = vector.broadcast %119 : vector<3x1xf32> to vector<3x128xf32>
    %121 = vector.broadcast %cst_17 : f32 to vector<3x128xf32>
    %122 = arith.select %117, %120, %121 : vector<3x128xi1>, vector<3x128xf32>
    %123 = arith.addf %115, %122 : vector<3x128xf32>
    %c17_i32 = arith.constant 17 : i32
    %124 = vector.broadcast %c17_i32 : i32 to vector<3x128xi32>
    %125 = arith.cmpi eq, %18, %124 : vector<3x128xi32>
    %126 = arith.mulf %4, %9 : vector<3x1xf32>
    %cst_18 = arith.constant 0.000000e+00 : f32
    %127 = vector.shape_cast %126 : vector<3x1xf32> to vector<3x1xf32>
    %128 = vector.broadcast %127 : vector<3x1xf32> to vector<3x128xf32>
    %129 = vector.broadcast %cst_18 : f32 to vector<3x128xf32>
    %130 = arith.select %125, %128, %129 : vector<3x128xi1>, vector<3x128xf32>
    %131 = arith.addf %123, %130 : vector<3x128xf32>
    %c18_i32 = arith.constant 18 : i32
    %132 = vector.broadcast %c18_i32 : i32 to vector<3x128xi32>
    %133 = arith.cmpi eq, %18, %132 : vector<3x128xi32>
    %134 = arith.mulf %5, %10 : vector<3x1xf32>
    %cst_19 = arith.constant 0.000000e+00 : f32
    %135 = vector.shape_cast %134 : vector<3x1xf32> to vector<3x1xf32>
    %136 = vector.broadcast %135 : vector<3x1xf32> to vector<3x128xf32>
    %137 = vector.broadcast %cst_19 : f32 to vector<3x128xf32>
    %138 = arith.select %133, %136, %137 : vector<3x128xi1>, vector<3x128xf32>
    %139 = arith.addf %131, %138 : vector<3x128xf32>
    %c19_i32 = arith.constant 19 : i32
    %140 = vector.broadcast %c19_i32 : i32 to vector<3x128xi32>
    %141 = arith.cmpi eq, %18, %140 : vector<3x128xi32>
    %142 = arith.mulf %6, %11 : vector<3x1xf32>
    %cst_20 = arith.constant 0.000000e+00 : f32
    %143 = vector.shape_cast %142 : vector<3x1xf32> to vector<3x1xf32>
    %144 = vector.broadcast %143 : vector<3x1xf32> to vector<3x128xf32>
    %145 = vector.broadcast %cst_20 : f32 to vector<3x128xf32>
    %146 = arith.select %141, %144, %145 : vector<3x128xi1>, vector<3x128xf32>
    %147 = arith.addf %139, %146 : vector<3x128xf32>
    %c20_i32 = arith.constant 20 : i32
    %148 = vector.broadcast %c20_i32 : i32 to vector<3x128xi32>
    %149 = arith.cmpi eq, %18, %148 : vector<3x128xi32>
    %150 = arith.mulf %7, %9 : vector<3x1xf32>
    %cst_21 = arith.constant 0.000000e+00 : f32
    %151 = vector.shape_cast %150 : vector<3x1xf32> to vector<3x1xf32>
    %152 = vector.broadcast %151 : vector<3x1xf32> to vector<3x128xf32>
    %153 = vector.broadcast %cst_21 : f32 to vector<3x128xf32>
    %154 = arith.select %149, %152, %153 : vector<3x128xi1>, vector<3x128xf32>
    %155 = arith.addf %147, %154 : vector<3x128xf32>
    %c21_i32 = arith.constant 21 : i32
    %156 = vector.broadcast %c21_i32 : i32 to vector<3x128xi32>
    %157 = arith.cmpi eq, %18, %156 : vector<3x128xi32>
    %158 = arith.mulf %8, %10 : vector<3x1xf32>
    %cst_22 = arith.constant 0.000000e+00 : f32
    %159 = vector.shape_cast %158 : vector<3x1xf32> to vector<3x1xf32>
    %160 = vector.broadcast %159 : vector<3x1xf32> to vector<3x128xf32>
    %161 = vector.broadcast %cst_22 : f32 to vector<3x128xf32>
    %162 = arith.select %157, %160, %161 : vector<3x128xi1>, vector<3x128xf32>
    %163 = arith.addf %155, %162 : vector<3x128xf32>
    %c32_i32 = arith.constant 32 : i32
    %164 = vector.broadcast %c32_i32 : i32 to vector<3x128xi32>
    %165 = arith.cmpi eq, %18, %164 : vector<3x128xi32>
    %166 = arith.mulf %14, %14 : vector<3x1xf32>
    %cst_23 = arith.constant 0.000000e+00 : f32
    %167 = vector.shape_cast %166 : vector<3x1xf32> to vector<3x1xf32>
    %168 = vector.broadcast %167 : vector<3x1xf32> to vector<3x128xf32>
    %169 = vector.broadcast %cst_23 : f32 to vector<3x128xf32>
    %170 = arith.select %165, %168, %169 : vector<3x128xi1>, vector<3x128xf32>
    %171 = arith.addf %163, %170 : vector<3x128xf32>
    %c36_i32 = arith.constant 36 : i32
    %172 = vector.broadcast %c36_i32 : i32 to vector<3x128xi32>
    %173 = arith.cmpi eq, %18, %172 : vector<3x128xi32>
    %174 = arith.mulf %17, %17 : vector<3x1xf32>
    %cst_24 = arith.constant 0.000000e+00 : f32
    %175 = vector.shape_cast %174 : vector<3x1xf32> to vector<3x1xf32>
    %176 = vector.broadcast %175 : vector<3x1xf32> to vector<3x128xf32>
    %177 = vector.broadcast %cst_24 : f32 to vector<3x128xf32>
    %178 = arith.select %173, %176, %177 : vector<3x128xi1>, vector<3x128xf32>
    %179 = arith.addf %171, %178 : vector<3x128xf32>
    %cst_25 = arith.constant dense<0.000000e+00> : vector<128xf32>
    %180 = vector.multi_reduction <add>, %179, %cst_25 [0] : vector<3x128xf32> to vector<128xf32>
    %181 = vector.shape_cast %180 : vector<128xf32> to vector<1x128xf32>
    %182 = tpu.iota {dimensions = array<i32: 1>} : vector<1x128xi32>
    %c32_i32_26 = arith.constant 32 : i32
    %183 = vector.broadcast %c32_i32_26 : i32 to vector<1x128xi32>
    %184 = arith.cmpi eq, %182, %183 : vector<1x128xi32>
    %c36_i32_27 = arith.constant 36 : i32
    %185 = vector.broadcast %c36_i32_27 : i32 to vector<1x128xi32>
    %186 = arith.cmpi eq, %182, %185 : vector<1x128xi32>
    %187 = arith.ori %184, %186 : vector<1x128xi1>
    %c6_i32 = arith.constant 6 : i32
    %188 = vector.broadcast %c6_i32 : i32 to vector<1x128xi32>
    %189 = arith.cmpi slt, %182, %188 : vector<1x128xi32>
    %cst_28 = arith.constant 1.000000e+00 : f32
    %cst_29 = arith.constant 0.000000e+00 : f32
    %190 = vector.broadcast %cst_28 : f32 to vector<1x128xf32>
    %191 = vector.broadcast %cst_29 : f32 to vector<1x128xf32>
    %192 = arith.select %189, %190, %191 : vector<1x128xi1>, vector<1x128xf32>
    %193 = arith.subf %181, %192 : vector<1x128xf32>
    %194 = arith.mulf %193, %193 : vector<1x128xf32>
    %195 = arith.select %187, %181, %194 : vector<1x128xi1>, vector<1x128xf32>
    %c8_i32_30 = arith.constant 8 : i32
    %196 = tpu.dynamic_rotate %195 by %c8_i32_30 dim 1 : vector<1x128xf32>, i32 -> vector<1x128xf32>
    %197 = arith.addf %195, %196 : vector<1x128xf32>
    %c120_i32 = arith.constant 120 : i32
    %198 = tpu.dynamic_rotate %195 by %c120_i32 dim 1 : vector<1x128xf32>, i32 -> vector<1x128xf32>
    %199 = arith.addf %197, %198 : vector<1x128xf32>
    %c1_i32_31 = arith.constant 1 : i32
    %200 = tpu.dynamic_rotate %199 by %c1_i32_31 dim 1 : vector<1x128xf32>, i32 -> vector<1x128xf32>
    %201 = arith.addf %199, %200 : vector<1x128xf32>
    %c127_i32 = arith.constant 127 : i32
    %202 = tpu.dynamic_rotate %199 by %c127_i32 dim 1 : vector<1x128xf32>, i32 -> vector<1x128xf32>
    %203 = arith.addf %201, %202 : vector<1x128xf32>
    %c9_i32_32 = arith.constant 9 : i32
    %204 = vector.broadcast %c9_i32_32 : i32 to vector<1x128xi32>
    %205 = arith.cmpi eq, %182, %204 : vector<1x128xi32>
    %c12_i32_33 = arith.constant 12 : i32
    %206 = vector.broadcast %c12_i32_33 : i32 to vector<1x128xi32>
    %207 = arith.cmpi eq, %182, %206 : vector<1x128xi32>
    %208 = arith.ori %205, %207 : vector<1x128xi1>
    %209 = arith.ori %208, %187 : vector<1x128xi1>
    %cst_34 = arith.constant 0.000000e+00 : f32
    %210 = vector.broadcast %cst_34 : f32 to vector<1x128xf32>
    %211 = arith.select %209, %203, %210 : vector<1x128xi1>, vector<1x128xf32>
    %212 = math.sqrt %211 : vector<1x128xf32>
    %c0_35 = arith.constant 0 : index
    %213 = memref.load %arg0[%c0_35] : memref<4xf32, #tpu.memory_space<smem>>
    %c1 = arith.constant 1 : index
    %214 = memref.load %arg0[%c1] : memref<4xf32, #tpu.memory_space<smem>>
    %c2 = arith.constant 2 : index
    %215 = memref.load %arg0[%c2] : memref<4xf32, #tpu.memory_space<smem>>
    %c3 = arith.constant 3 : index
    %216 = memref.load %arg0[%c3] : memref<4xf32, #tpu.memory_space<smem>>
    %cst_36 = arith.constant 2.000000e+00 : f32
    %cst_37 = arith.constant 1.000000e+00 : f32
    %217 = vector.broadcast %cst_36 : f32 to vector<1x128xf32>
    %218 = vector.broadcast %cst_37 : f32 to vector<1x128xf32>
    %219 = arith.select %187, %217, %218 : vector<1x128xi1>, vector<1x128xf32>
    %220 = vector.broadcast %214 : f32 to vector<1x128xf32>
    %221 = vector.broadcast %215 : f32 to vector<1x128xf32>
    %222 = arith.select %187, %220, %221 : vector<1x128xi1>, vector<1x128xf32>
    %223 = vector.broadcast %216 : f32 to vector<1x128xf32>
    %224 = arith.mulf %222, %223 : vector<1x128xf32>
    %225 = arith.minimumf %212, %219 : vector<1x128xf32>
    %226 = arith.mulf %225, %224 : vector<1x128xf32>
    %cst_38 = arith.constant dense<0.000000e+00> : vector<1xf32>
    %227 = vector.multi_reduction <add>, %226, %cst_38 [1] : vector<1x128xf32> to vector<1xf32>
    %228 = vector.shape_cast %227 : vector<1xf32> to vector<1x1xf32>
    %c1_i32_39 = arith.constant 1 : i32
    %229 = vector.broadcast %c1_i32_39 : i32 to vector<1x128xi32>
    %230 = arith.cmpi eq, %182, %229 : vector<1x128xi32>
    %231 = vector.broadcast %213 : f32 to vector<1x1xf32>
    %232 = arith.addf %231, %228 : vector<1x1xf32>
    %233 = vector.shape_cast %232 : vector<1x1xf32> to vector<1x1xf32>
    %234 = vector.broadcast %233 : vector<1x1xf32> to vector<1x128xf32>
    %235 = arith.select %230, %234, %212 : vector<1x128xi1>, vector<1x128xf32>
    %c0_40 = arith.constant 0 : index
    %c0_41 = arith.constant 0 : index
    %236 = vector.load %arg4[%c0_40, %c0_41] : memref<1x128xf32, #tpu.memory_space<vmem>>, vector<1x128xf32>
    tpu.vector_store %arg4[%c0_40, %c0_41], %235 {strides = array<i32>} : memref<1x128xf32, #tpu.memory_space<vmem>>, vector<1x128xf32>,
    return
  }
}

</mosaic_0001>

<bundles_post_ra>
// kernel: _overall_loss_impl.1
= control target key start
LH: loop header
LB: loop body
LE: loop exit
PB: predicated region body
PF: predicated region fallthrough
CT: control target
= control target key end

     0   :  { %9 = vsyncpa [#allocation4], 0  ;;  %s492_s0 = inlined_call_operand.vmem [shape: f32[4], index: 0, kind: input, shape index: {}]   ;;  %s493_s1 = inlined_call_operand.vmem [shape: f32[4,4], index: 1, kind: input, shape index: {}]   ;;  %s494_s2 = inlined_call_operand.vmem [shape: f32[4,4], index: 2, kind: input, shape index: {}]   ;;  %s495_s3 = inlined_call_operand.vmem [shape: f32[4,4], index: 3, kind: input, shape index: {}]   ;;  %s496_s4 = inlined_call_operand.hbm [shape: f32[1,128], index: 4, kind: output, shape index: {}]  }
   0x1   :  { %10 = vsyncpa [#allocation3], 0  ;;  %s17_s17 = sshll.u32 %s492_s0, 4  ;;  %s18_s17 = int_to_ptr.vmem [resolvable:$true] %s17_s17 }
   0x2   :  { %s322_s18 = scalar_lea.vmem %s18_s17, 16  ;;  %p327_p1 = scmp.lt.s32.totalorder %s18_s17, %s18_s17 }
   0x3   :  { %p323_p0 = scmp.ne.s32.totalorder %s18_s17, %s322_s18  ;;  %p328_p2 = scmp.lt.s32.totalorder %s322_s18, %s322_s18 }
   0x5   :  { %p329_p3 = por %p328_p2, %p327_p1 }
   0x7   :  { %p330_p4 = pnand %p329_p3, %p323_p0 }
   0x9   :  { %333 = shalt.err (!%p330_p4)
}
   0xa   :  { %s360_s19 = smov [#allocation2]  }
   0xb   :  { %20 = dma.vmem_to_smem %s18_s17, 16, %s360_s19, [#allocation4]  }
   0xc   :  { %356 = dma.done.wait [#allocation4], 16  }
   0xd   :  { %357 = vsyncadd [#allocation4], 4294967280 }
   0xe   :  { %30 = sfence }
   0xf   :  { %v405_v0 = vld [vmem:[%s495_s3] sm:$0xf]  ;;  %s361_s22 = smov 127   ;;  %v362_v1 = vmov 1   ;;  %s363_s0 = smov 126   ;;  %v364_v2 = vmov 0   ;;  %v36_v25 = vlaneseq }
  0x10   :  { %86 = vrot.lane.b32.xlu0 %v405_v0, %s361_s22  ;;  %304 = vset.pattern.permute.xlu1 %v362_v1  ;;  %v31_v3 = vld [vmem:[%s493_s1] sm:$0xf]  ;;  %s365_s25 = smov 2   ;;  %s366_s3 = smov 1   ;;  %v367_v7 = vmov 2   ;;  %v368_v21 = vmov 3  }
  0x11   :  { %142 = vrot.lane.b32.xlu1 %v405_v0, %s363_s0  ;;  %303 = vset.pattern.permute.xlu0 %v364_v2  ;;  %v39_v4 = vmul.f32 %v405_v0, %v31_v3  ;;  %v32_v5 = vld [vmem:[%s494_s2] sm:$0xf]  ;;  %v34_v18 = vsub.f32 %v31_v3, %v405_v0  ;;  %v423_v26 = vand.u32 127, %v36_v25  ;;  %s370_s1 = smov 120   ;;  %s371_s2 = smov 8  }
  0x12   :  { %v62_v6 = vmul.f32 %v405_v0, %v32_v5  ;;  %v35_v23 = vsub.f32 %v32_v5, %v405_v0  ;;  %s286_s28 = sld [smem:[#allocation2 + $0x1]]  ;;  %s287_s29 = sld [smem:[#allocation2 + $0x2]] }
  0x13   :  { %v198_v20 = vmul.f32 %v34_v18, %v34_v18  ;;  %vm47_vm0 = vcmp.eq.s32.totalorder %v423_v26, 1  ;;  %vm38_vm1 = vcmp.eq.s32.totalorder %v423_v26, 0  ;;  %vm54_vm2 = vcmp.eq.s32.totalorder %v423_v26, 2  ;;  %s288_s30 = sld [smem:[#allocation2 + $0x3]]  ;;  %s251_s5 = sld [smem:[#allocation2]] }
  0x14   :  { %105 = vrot.lane.b32.xlu0 %v405_v0, %s365_s25  ;;  %v207_v24 = vmul.f32 %v35_v23, %v35_v23  ;;  %vm61_vm3 = vcmp.eq.s32.totalorder %v423_v26, 3  ;;  %vm70_vm4 = vcmp.eq.s32.totalorder %v423_v26, 4  ;;  %vm77_vm5 = vcmp.eq.s32.totalorder %v423_v26, 5  ;;  %s373_s6 = smov [#allocation5]  }
  0x15   :  { %154 = vrot.lane.b32.xlu1 %v405_v0, %s366_s3  ;;  %vm84_vm6 = vcmp.eq.s32.totalorder %v423_v26, 8  ;;  %vm97_vm7 = vcmp.eq.s32.totalorder %v423_v26, 9  ;;  %vm104_vm8 = vcmp.eq.s32.totalorder %v423_v26, 10  ;;  %vm116_vm9 = vcmp.eq.s32.totalorder %v423_v26, 11  ;;  %s277_s7 = sshll.u32 %s373_s6, 4  ;;  %s278_s7 = int_to_ptr.vmem [resolvable:$true] %s277_s7 }
  0x16   :  { %vm125_vm10 = vcmp.eq.s32.totalorder %v423_v26, 12  ;;  %vm132_vm11 = vcmp.eq.s32.totalorder %v423_v26, 13  ;;  %vm153_vm12 = vcmp.eq.s32.totalorder %v423_v26, 17  ;;  %vm141_vm13 = vcmp.eq.s32.totalorder %v423_v26, 16  ;;  %s334_s8 = scalar_lea.vmem %s278_s7, 16  ;;  %s338_s9 = scalar_lea.vmem %s278_s7, 32 }
  0x17   :  { %vm165_vm14 = vcmp.eq.s32.totalorder %v423_v26, 18  ;;  %vm172_vm15 = vcmp.eq.s32.totalorder %v423_v26, 19  ;;  %p335_p5 = scmp.ne.s32.totalorder %s278_s7, %s334_s8  ;;  %p339_p6 = scmp.lt.s32.totalorder %s278_s7, %s278_s7 }
  0x18   :  { %42 = vperm.xlu0 %303, %v39_v4   ;;  %p340_p7 = scmp.lt.s32.totalorder %s338_s9, %s334_s8 }
  0x19   :  { %49 = vperm.xlu1 %304, %v39_v4  }
  0x1a   :  { %p341_p8 = por %p340_p7, %p339_p6 }
  0x1c   :  { %65 = vperm.xlu0 %303, %v62_v6   ;;  %p342_p9 = pnand %p341_p8, %p335_p5 }
  0x1d   :  { %305 = vset.pattern.permute.xlu1 %v367_v7 }
  0x1e   :  { %56 = vperm.xlu1 %305, %v39_v4  }
  0x20   :  { %307 = vset.pattern.permute.xlu0 %v367_v7 }
  0x21   :  { %79 = vperm.xlu0 %307, %v62_v6  }
  0x22   :  { %306 = vset.pattern.permute.xlu1 %v362_v1 }
  0x23   :  { %72 = vperm.xlu1 %306, %v62_v6  }
  0x27   :  { %308 = vset.pattern.permute.xlu1 %v364_v2 }
  0x82   :  { %v87_v8 = vpop.permute.xlu0 %86 }
  0x83   :  { %v89_v9 = vmul.f32 %v87_v8, %v31_v3  ;;  %v143_v10 = vpop.permute.xlu1 %142  ;;  %v117_v14 = vmul.f32 %v87_v8, %v32_v5 }
  0x84   :  { %v173_v17 = vmul.f32 %v143_v10, %v32_v5  ;;  %v145_v19 = vmul.f32 %v143_v10, %v31_v3 }
  0x85   :  { %92 = vperm.xlu1 %308, %v89_v9  }
  0x86   :  { %v106_v11 = vpop.permute.xlu0 %105 }
  0x87   :  { %v108_v12 = vmul.f32 %v106_v11, %v31_v3  ;;  %v155_v13 = vpop.permute.xlu1 %154  ;;  %v133_v16 = vmul.f32 %v106_v11, %v32_v5 }
  0x88   :  { %v157_v15 = vmul.f32 %v155_v13, %v31_v3  ;;  %v182_v22 = vmul.f32 %v155_v13, %v32_v5 }
  0x89   :  { %309 = vset.pattern.permute.xlu1 %v362_v1  ;;  %111 = vperm.xlu0 %307, %v108_v12  }
  0x8a   :  { %99 = vperm.xlu1 %309, %v89_v9  }
  0x8d   :  { %311 = vset.pattern.permute.xlu0 %v362_v1 }
  0x8e   :  { %310 = vset.pattern.permute.xlu1 %v364_v2  ;;  %127 = vperm.xlu0 %311, %v117_v14  }
  0x8f   :  { %120 = vperm.xlu1 %310, %v117_v14  }
  0x92   :  { %160 = vperm.xlu0 %311, %v157_v15  }
  0x93   :  { %312 = vset.pattern.permute.xlu1 %v367_v7 }
  0x94   :  { %136 = vperm.xlu1 %312, %v133_v16  }
  0x96   :  { %315 = vset.pattern.permute.xlu0 %v364_v2 }
  0x97   :  { %176 = vperm.xlu0 %315, %v173_v17   ;;  %v43_v28 = vpop.permute.xlu0 %42 }
  0x98   :  { %313 = vset.pattern.permute.xlu1 %v364_v2  ;;  %v50_v27 = vpop.permute.xlu1 %49  ;;  %v45_v30 = vsel %vm38_vm1, %v43_v28, 0.0  ;;  %vm181_vm1 = vcmp.eq.s32.totalorder %v423_v26, 20 }
  0x99   :  { %148 = vperm.xlu1 %313, %v145_v19   ;;  %v52_v29 = vsel %vm47_vm0, %v50_v27, 0.0 }
  0x9a   :  { %v53_v32 = vadd.f32 %v52_v29, %v45_v30  ;;  %v369_v29 = vmov 0.0  }
  0x9b   :  { %316 = vset.pattern.permute.xlu0 %v368_v21  ;;  %v66_v34 = vpop.permute.xlu0 %65 }
  0x9c   :  { %201 = vperm.xlu0 %316, %v198_v20   ;;  %v68_v36 = vsel %vm61_vm3, %v66_v34, 0.0  ;;  %vm197_vm3 = vcmp.eq.s32.totalorder %v423_v26, 32 }
  0x9d   :  { %314 = vset.pattern.permute.xlu1 %v367_v7  ;;  %v57_v31 = vpop.permute.xlu1 %56 }
  0x9e   :  { %167 = vperm.xlu1 %314, %v157_v15   ;;  %v59_v33 = vsel %vm54_vm2, %v57_v31, 0.0  ;;  %vm190_vm2 = vcmp.eq.s32.totalorder %v423_v26, 21 }
  0x9f   :  { %v60_v35 = vadd.f32 %v59_v33, %v53_v32 }
  0xa0   :  { %v80_v40 = vpop.permute.xlu0 %79 }
  0xa1   :  { %v69_v38 = vadd.f32 %v68_v36, %v60_v35  ;;  %v82_v42 = vsel %vm77_vm5, %v80_v40, 0.0  ;;  %vm215_vm5 = vcmask 1042432  }
  0xa2   :  { %317 = vset.pattern.permute.xlu1 %v362_v1  ;;  %v73_v37 = vpop.permute.xlu1 %72 }
  0xa3   :  { %185 = vperm.xlu1 %317, %v182_v22   ;;  %v75_v39 = vsel %vm70_vm4, %v73_v37, 0.0  ;;  %vm206_vm4 = vcmp.eq.s32.totalorder %v423_v26, 36 }
  0xa4   :  { %v76_v41 = vadd.f32 %v75_v39, %v69_v38 }
  0xa6   :  { %v83_v45 = vadd.f32 %v82_v42, %v76_v41 }
  0xa7   :  { %318 = vset.pattern.permute.xlu1 %v367_v7 }
  0xa8   :  { %192 = vperm.xlu1 %318, %v182_v22  }
  0xac   :  { %319 = vset.pattern.permute.xlu1 %v368_v21 }
  0xad   :  { %210 = vperm.xlu1 %319, %v207_v24  }
 0x104   :  { %v93_v43 = vpop.permute.xlu1 %92 }
 0x105   :  { %v95_v44 = vsel %vm84_vm6, %v93_v43, 0.0  ;;  %vm224_vm6 = vcmp.lt.s32.totalorder %v423_v26, 6 }
 0x106   :  { %v96_v46 = vadd.f32 %v95_v44, %v83_v45  ;;  %v225_v30 = vsel %vm224_vm6, 1.0, %v369_v29  ;;  %v256_v45 = vstv %s286_s28 }
 0x108   :  { %v112_v48 = vpop.permute.xlu0 %111 }
 0x109   :  { %v100_v47 = vpop.permute.xlu1 %99  ;;  %v114_v50 = vsel %vm104_vm8, %v112_v48, 0.0  ;;  %vm460_vm8 = vmor %vm197_vm3, %vm206_vm4 }
 0x10a   :  { %v102_v49 = vsel %vm97_vm7, %v100_v47, 0.0 }
 0x10b   :  { %v103_v51 = vadd.f32 %v102_v49, %v96_v46  ;;  %v257_v46 = vstv %s287_s29  ;;  %v259_v49 = vstv %s288_s30 }
 0x10c   :  { %v258_v48 = vsel %vm460_vm8, %v256_v45, %v257_v46 }
 0x10d   :  { %v115_v52 = vadd.f32 %v114_v50, %v103_v51  ;;  %v128_v55 = vpop.permute.xlu0 %127 }
 0x10e   :  { %v121_v53 = vpop.permute.xlu1 %120  ;;  %v130_v57 = vsel %vm125_vm10, %v128_v55, 0.0  ;;  %v260_v55 = vmul.f32 %v259_v49, %v258_v48 }
 0x10f   :  { %v123_v54 = vsel %vm116_vm9, %v121_v53, 0.0  ;;  %vm241_vm9 = vmor %vm97_vm7, %vm125_vm10 }
 0x110   :  { %v124_v56 = vadd.f32 %v123_v54, %v115_v52  ;;  %v372_v52 = vmov 1.0  }
 0x111   :  { %v161_v62 = vpop.permute.xlu0 %160  ;;  %v255_v53 = vsel %vm460_vm8, 2.0, %v372_v52 }
 0x112   :  { %v131_v59 = vadd.f32 %v130_v57, %v124_v56  ;;  %v163_v0 = vsel %vm153_vm12, %v161_v62, 0.0  ;;  %vm263_vm12 = vcmask 1040384  }
 0x113   :  { %v137_v58 = vpop.permute.xlu1 %136 }
 0x114   :  { %v139_v60 = vsel %vm132_vm11, %v137_v58, 0.0  ;;  %vm242_vm11 = vmor %vm241_vm9, %vm460_vm8 }
 0x115   :  { %v140_v61 = vadd.f32 %v139_v60, %v131_v59  ;;  %v267_v60 = vstv %s251_s5 }
 0x116   :  { %v177_v6 = vpop.permute.xlu0 %176 }
 0x117   :  { %v179_v8 = vsel %vm172_vm15, %v177_v6, 0.0 }
 0x118   :  { %v149_v63 = vpop.permute.xlu1 %148 }
 0x119   :  { %v151_v1 = vsel %vm141_vm13, %v149_v63, 0.0 }
 0x11a   :  { %v152_v2 = vadd.f32 %v151_v1, %v140_v61 }
 0x11b   :  { %v202_v12 = vpop.permute.xlu0 %201 }
 0x11c   :  { %v164_v3 = vadd.f32 %v163_v0, %v152_v2  ;;  %v204_v16 = vsel %vm197_vm3, %v202_v12, 0.0 }
 0x11d   :  { %v168_v4 = vpop.permute.xlu1 %167 }
 0x11e   :  { %v170_v5 = vsel %vm165_vm14, %v168_v4, 0.0 }
 0x11f   :  { %v171_v7 = vadd.f32 %v170_v5, %v164_v3 }
 0x121   :  { %v180_v10 = vadd.f32 %v179_v8, %v171_v7 }
 0x122   :  { %v186_v9 = vpop.permute.xlu1 %185 }
 0x123   :  { %v188_v11 = vsel %vm181_vm1, %v186_v9, 0.0 }
 0x124   :  { %v189_v13 = vadd.f32 %v188_v11, %v180_v10 }
 0x127   :  { %v193_v14 = vpop.permute.xlu1 %192 }
 0x128   :  { %v195_v15 = vsel %vm190_vm2, %v193_v14, 0.0 }
 0x129   :  { %v196_v17 = vadd.f32 %v195_v15, %v189_v13 }
 0x12b   :  { %v205_v18 = vadd.f32 %v204_v16, %v196_v17 }
 0x12c   :  { %v211_v19 = vpop.permute.xlu1 %210 }
 0x12d   :  { %v213_v20 = vsel %vm206_vm4, %v211_v19, 0.0 }
 0x12e   :  { %v214_v21 = vadd.f32 %v213_v20, %v205_v18 }
 0x130   :  { %v216_v22 = vsel %vm215_vm5, %v214_v21, 0.0 }
 0x131   :  { %v217_v23 = vrot.slane %v216_v22, 4 }
 0x133   :  { %v218_v24 = vadd.f32 %v217_v23, %v216_v22 }
 0x135   :  { %v219_v25 = vrot.slane %v218_v24, 2 }
 0x137   :  { %v220_v27 = vadd.f32 %v219_v25, %v218_v24 }
 0x139   :  { %v221_v28 = vrot.slane %v220_v27, 1 }
 0x13b   :  { %v222_v31 = vadd.f32 %v221_v28, %v220_v27 }
 0x13d   :  { %v226_v32 = vsub.f32 %v222_v31, %v225_v30 }
 0x13f   :  { %v227_v34 = vmul.f32 %v226_v32, %v226_v32 }
 0x141   :  { %v228_v35 = vsel %vm460_vm8, %v222_v31, %v227_v34 }
 0x142   :  { %232 = vrot.lane.b32.xlu0 %v228_v35, %s370_s1  ;;  %229 = vrot.lane.b32.xlu1 %v228_v35, %s371_s2 }
 0x1b4   :  { %v230_v36 = vpop.permute.xlu1 %229  ;;  %v233_v38 = vpop.permute.xlu0 %232 }
 0x1b5   :  { %v231_v37 = vadd.f32 %v230_v36, %v228_v35 }
 0x1b7   :  { %v234_v39 = vadd.f32 %v233_v38, %v231_v37 }
 0x1b9   :  { %238 = vrot.lane.b32.xlu0 %v234_v39, %s361_s22  ;;  %235 = vrot.lane.b32.xlu1 %v234_v39, %s366_s3 }
 0x22b   :  { %v236_v40 = vpop.permute.xlu1 %235  ;;  %v239_v42 = vpop.permute.xlu0 %238 }
 0x22c   :  { %v237_v41 = vadd.f32 %v236_v40, %v234_v39 }
 0x22e   :  { %v240_v43 = vadd.f32 %v239_v42, %v237_v41 }
 0x230   :  { %v243_v44 = vsel %vm242_vm11, %v240_v43, 0.0 }
 0x231   :  { %320 = vrsqrt.f32 %v243_v44  ;;  %vm246_vm7 = vcmp.eq.f32.partialorder %v243_v44, inf  ;;  %v249_v51 = vand.u32 2147483648, %v243_v44  ;;  %vm248_vm10 = vcmp.eq.f32.partialorder %v243_v44, 0.0 }
 0x23b   :  { %v321_v47 = vpop.eup %320 }
 0x23c   :  { %v245_v50 = vmul.f32 %v321_v47, %v243_v44 }
 0x23e   :  { %v247_v54 = vsel %vm246_vm7, %v243_v44, %v245_v50 }
 0x23f   :  { %v250_v56 = vsel %vm248_vm10, %v249_v51, %v247_v54 }
 0x240   :  { %v261_v57 = vmin.f32 %v250_v56, %v255_v53 }
 0x242   :  { %v262_v58 = vmul.f32 %v261_v57, %v260_v55 }
 0x244   :  { %v264_v59 = vsel %vm263_vm12, %v262_v58, 0.0 }
 0x245   :  { %265 = vadd.xlane.f32.xlu1 %v264_v59 }
 0x2d2   :  { %v266_v61 = vpop.xlane.xlu1 %265 }
 0x2d3   :  { %v268_v62 = vadd.f32 %v267_v60, %v266_v61 }
 0x2d5   :  { %v269_v63 = vsel %vm47_vm0, %v268_v62, %v250_v56 }
 0x2d6   :  { %270 = vst [vmem:[#allocation5] sm:$0x1] %v269_v63 }
 0x2d7   :  { %345 = shalt.err (!%p342_p9)
}
 0x2d8   :  { %s346_s12 = scalar_lea.hbm %s496_s4, 16 }
 0x2d9   :  { %p347_p10 = scmp.ne.s32.totalorder %s496_s4, %s346_s12  ;;  %p350_p11 = scmp.lt.u32.totalorder %s346_s12, %s496_s4 }
 0x2db   :  { %p352_p12 = pnand %p350_p11, %p347_p10 }
 0x2dd   :  { %355 = shalt.err (!%p352_p12)
}
 0x2de   :  { %280 = dma.vmem_to_hbm [thread:$0]  %s278_s7, 16, %s496_s4, [#allocation3]  }
 0x2df   :  { %358 = dma.done.wait [#allocation3], 16  }
 0x2e0   :  { %359 = vsyncadd [#allocation3], 4294967280 }
 0x2e1   :  { %284 = vsyncpa [#allocation3], 1 }
 0x2e2   :  { %285 = vsyncpa [#allocation4], 1 }

</bundles_post_ra>
